<compile_context>
chip_gen: v7x
topology: tpu7x:2x2x1
jax: 0.10.0
libtpu: 0.0.40
codegen_flags: <defaults>
</compile_context>

<pallas_src>
import jax
import jax.numpy as jnp
from jax.experimental import pallas as pl
from jax.experimental.pallas import tpu as pltpu


def _permute_kernel(x_ref, v1_ref):
    # x_ref:  (B, ts, td) input tile
    # v1_ref: (B, td, ts) output tile
    # The BlockSpec index maps already swap the (s-tile, d-tile) grid
    # coordinates, so only the intra-tile transpose is done here.
    v1_ref[...] = jnp.swapaxes(x_ref[...], 1, 2)


def _tile(extent, preferred):
    # Use a lane/sublane-friendly tile when it evenly divides the axis,
    # otherwise fall back to the full extent (full-extent blocks are always
    # legal w.r.t. the (8, 128) constraint).
    return preferred if (extent >= preferred and extent % preferred == 0) else extent


def permute_linear(x, weight=None, bias=None):
    """JAX/Pallas equivalent of Model.forward — returns v1 = permute(x, (0, 2, 1)).

    `weight` / `bias` are accepted only to mirror the module signature; the
    linear output v2 is dead in the original module and is not computed.
    """
    B, S, D = x.shape

    ts = _tile(S, 128)  # S-tile: becomes the lane axis of the OUTPUT tile
    td = _tile(D, 128)  # D-tile: lane axis of the INPUT tile
    grid = (S // ts, D // td)

    return pl.pallas_call(
        _permute_kernel,
        out_shape=jax.ShapeDtypeStruct((B, D, S), x.dtype),
        grid_spec=pltpu.PrefetchScalarGridSpec(
            num_scalar_prefetch=0,
            grid=grid,
            in_specs=[pl.BlockSpec((B, ts, td), lambda i, j: (0, i, j))],
            out_specs=pl.BlockSpec((B, td, ts), lambda i, j: (0, j, i)),
        ),
        compiler_params=pltpu.CompilerParams(
            dimension_semantics=("parallel", "parallel"),
        ),
    )(x)


if __name__ == "__main__":
    key = jax.random.PRNGKey(0)
    kx, kw, kb = jax.random.split(key, 3)

    # Spec shapes from the PyTorch module: x1 = torch.randn(1, 2, 2), Linear(2, 2)
    B, S, D = 1, 2, 2
    IN, OUT = 2, 2

    x1 = jax.random.normal(kx, (B, S, D), dtype=jnp.float32)
    bound = 1.0 / (IN ** 0.5)
    weight = jax.random.uniform(kw, (OUT, IN), jnp.float32, -bound, bound)
    bias = jax.random.uniform(kb, (OUT,), jnp.float32, -bound, bound)

    out = jax.block_until_ready(permute_linear(x1, weight, bias))
    ref = jnp.swapaxes(x1, 1, 2)
    assert out.shape == (B, D, S)
    assert bool(jnp.allclose(out, ref)), "permute output mismatch (tiny shape)"

    # Also exercise the gridded, lane-dense tiled path at a modest size.
    x_big = jax.random.normal(kx, (1, 256, 384), dtype=jnp.float32)
    out_big = jax.block_until_ready(permute_linear(x_big))
    assert out_big.shape == (1, 384, 256)
    assert bool(jnp.allclose(out_big, jnp.swapaxes(x_big, 1, 2))), \
        "permute output mismatch (tiled shape)"

    print("KERNEL_OK")
</pallas_src>

<mosaic_0001>
module attributes {stable_mosaic.version = 11 : i64} {
  func.func @_permute_kernel(%arg0: i32, %arg1: i32, %arg2: memref<1x2x2xf32, #tpu.memory_space<vmem>>, %arg3: memref<1x2x2xf32, #tpu.memory_space<vmem>>) attributes {dimension_semantics = [#tpu.dimension_semantics<parallel>, #tpu.dimension_semantics<parallel>], iteration_bounds = array<i64: 1, 1>, scalar_prefetch = 0 : i64, scratch_operands = 0 : i64, tpu.core_type = #tpu.core_type<tc>, window_params = [{transform_indices = @transform_0, window_bounds = array<i64: 1, 2, 2>}, {transform_indices = @transform_1, window_bounds = array<i64: 1, 2, 2>}]} {
    %c0 = arith.constant 0 : index
    %c0_0 = arith.constant 0 : index
    %c0_1 = arith.constant 0 : index
    %0 = vector.load %arg2[%c0, %c0_0, %c0_1] : memref<1x2x2xf32, #tpu.memory_space<vmem>>, vector<1x2x2xf32>
    %1 = tpu.transpose %0, [0, 2, 1] : vector<1x2x2xf32> -> vector<1x2x2xf32>
    %c0_2 = arith.constant 0 : index
    %c0_3 = arith.constant 0 : index
    %c0_4 = arith.constant 0 : index
    %2 = vector.load %arg3[%c0_2, %c0_3, %c0_4] : memref<1x2x2xf32, #tpu.memory_space<vmem>>, vector<1x2x2xf32>
    tpu.vector_store %arg3[%c0_2, %c0_3, %c0_4], %1 {strides = array<i32>} : memref<1x2x2xf32, #tpu.memory_space<vmem>>, vector<1x2x2xf32>,
    return
  }
  func.func @transform_0(%arg0: i32, %arg1: i32) -> (i32, i32, i32) {
    %c0_i32 = arith.constant 0 : i32
    %c0_i32_0 = arith.constant 0 : i32
    return %c0_i32, %arg0, %arg1 : i32, i32, i32
  }
  func.func @transform_1(%arg0: i32, %arg1: i32) -> (i32, i32, i32) {
    %c0_i32 = arith.constant 0 : i32
    %c0_i32_0 = arith.constant 0 : i32
    return %c0_i32, %arg1, %arg0 : i32, i32, i32
  }
}

</mosaic_0001>

<bundles_post_ra>
// kernel: tpu_custom_call.1
= control target key start
LH: loop header
LB: loop body
LE: loop exit
PB: predicated region body
PF: predicated region fallthrough
CT: control target
= control target key end

     0   :  { %6 = vsyncpa [#allocation3], 0  ;;  %s158_s0 = inlined_call_operand.hbm [shape: f32[1,2,2], index: 0, kind: input, shape index: {}]   ;;  %s159_s1 = inlined_call_operand.hbm [shape: f32[1,2,2], index: 1, kind: output, shape index: {}]  }
   0x1   :  { %7 = vsyncpa [#allocation4], 0  ;;  %s122_s6 = smov [#allocation2]   ;;  %s74_s10 = scalar_lea.hbm %s158_s0, 32 }
   0x2   :  { %s14_s7 = sshll.u32 %s122_s6, 4  ;;  %p75_p0 = scmp.ne.s32.totalorder %s158_s0, %s74_s10  ;;  %s15_s7 = int_to_ptr.vmem [resolvable:$true] %s14_s7 }
   0x3   :  { %p78_p1 = scmp.lt.u32.totalorder %s74_s10, %s158_s0 }
   0x5   :  { %p80_p2 = pnand %p78_p1, %p75_p0 }
   0x7   :  { %83 = shalt.err (!%p80_p2)
}
   0x8   :  { %s84_s15 = scalar_lea.vmem %s15_s7, 32  ;;  %p89_p4 = scmp.lt.s32.totalorder %s15_s7, %s15_s7 }
   0x9   :  { %p85_p3 = scmp.ne.s32.totalorder %s15_s7, %s84_s15  ;;  %p90_p5 = scmp.lt.s32.totalorder %s84_s15, %s84_s15 }
   0xb   :  { %p91_p6 = por %p90_p5, %p89_p4 }
   0xd   :  { %p92_p7 = pnand %p91_p6, %p85_p3 }
   0xf   :  { %95 = shalt.err (!%p92_p7)
}
  0x10   :  { %17 = dma.hbm_to_vmem [thread:$0]  %s158_s0, 32, %s15_s7, [#allocation3]  }
  0x11   :  { %118 = dma.done.wait [#allocation3], 32  }
  0x12   :  { %119 = vsyncadd [#allocation3], 4294967264  ;;  %v21_v0 = vld [vmem:[#allocation2] sm:$0x3]  ;;  %s123_s18 = smov [#allocation5]   ;;  %vm54_vm0 = vcmask 9216  }
  0x13   :  { %22 = vxpose.xlu0.b32.start.end [1/1] (short) (narrow) %v21_v0, 8  ;;  %s62_s19 = sshll.u32 %s123_s18, 4  ;;  %s63_s19 = int_to_ptr.vmem [resolvable:$true] %s62_s19 }
  0x14   :  { %s96_s20 = scalar_lea.vmem %s63_s19, 32  ;;  %p101_p9 = scmp.lt.s32.totalorder %s63_s19, %s63_s19 }
  0x15   :  { %p97_p8 = scmp.ne.s32.totalorder %s63_s19, %s96_s20  ;;  %p102_p10 = scmp.lt.s32.totalorder %s96_s20, %s96_s20 }
  0x17   :  { %p103_p11 = por %p102_p10, %p101_p9 }
  0x19   :  { %p104_p12 = pnand %p103_p11, %p97_p8 }
  0x93   :  { %v38_v1 = vpop.trf.xlu0 }
  0x94   :  { %55 = vst.msk [vmem:[#allocation5] sm:$0x3] %vm54_vm0, %v38_v1 }
  0x95   :  { %107 = shalt.err (!%p104_p12)
}
  0x96   :  { %s108_s0 = scalar_lea.hbm %s159_s1, 32 }
  0x97   :  { %p109_p13 = scmp.ne.s32.totalorder %s159_s1, %s108_s0  ;;  %p112_p0 = scmp.lt.u32.totalorder %s108_s0, %s159_s1 }
  0x99   :  { %p114_p1 = pnand %p112_p0, %p109_p13 }
  0x9b   :  { %117 = shalt.err (!%p114_p1)
}
  0x9c   :  { %65 = dma.vmem_to_hbm [thread:$0]  %s63_s19, 32, %s159_s1, [#allocation4]  }
  0x9d   :  { %120 = dma.done.wait [#allocation4], 32  }
  0x9e   :  { %121 = vsyncadd [#allocation4], 4294967264 }
  0x9f   :  { %69 = vsyncpa [#allocation3], 1 }
  0xa0   :  { %70 = vsyncpa [#allocation4], 1 }

</bundles_post_ra>
